<compile_context>
chip_gen: v7x
topology: tpu7x:2x2x1
jax: 0.10.0
libtpu: 0.0.40
codegen_flags: <defaults>
</compile_context>

<pallas_src>
import functools
import math

import jax
import jax.numpy as jnp
from jax.experimental import pallas as pl
from jax.experimental.pallas import tpu as pltpu


# Cache: does this backend lower the in-kernel (Bt, Q, Dv) -> (Bt, Q*Dv) flatten?
_FLAT_OUTPUT_OK = None


# ---------------------------------------------------------------------------
# Kernel body
# ---------------------------------------------------------------------------
def _sdpa_kernel(*refs, masked: bool, flat_out: bool, scale):
    """One grid step: `Bt` whole (batch) attention problems, resident in VMEM.

    refs = (q_ref, k_ref, v_ref[, mask_ref], out_ref)
      q_ref    : (Bt, Q, D)   matmul dtype (bf16 or f32)
      k_ref    : (Bt, K, D)   matmul dtype
      v_ref    : (Bt, K, Dv)  matmul dtype
      mask_ref : (Bt, 1, K) or (Bt, Q, K) float32; 1.0 = valid key, 0.0 = masked
      out_ref  : (Bt, Q, Dv), or (Bt, Q*Dv) when flat_out
    """
    if masked:
        q_ref, k_ref, v_ref, mask_ref, out_ref = refs
    else:
        q_ref, k_ref, v_ref, out_ref = refs

    q = q_ref[...]
    k = k_ref[...]
    v = v_ref[...]

    # Fold 1/sqrt(d) into Q (VPU pass over Bt*Q*D) rather than into the
    # (Bt, Q, K) scores tensor (K/D x less VALU work).  When the wrapper already
    # folded the scale into its bf16 cast, `scale` is None and we skip it.
    if scale is not None:
        q = q * jnp.asarray(scale, dtype=q.dtype)

    # Batched Q @ K^T on the MXU with f32 accumulation.
    scores = jnp.einsum("bqd,bkd->bqk", q, k,
                        preferred_element_type=jnp.float32)

    # d2l masked_softmax semantics: scores at key positions >= valid_len are
    # replaced by -1e6.  The mask is precomputed (already 3-D) in the wrapper
    # so no iota and no rank-changing relayout is needed here.
    if masked:
        scores = jnp.where(mask_ref[...] > 0.5, scores, jnp.float32(-1e6))

    # Numerically-stable softmax over keys, all in f32 on the VPU/EUP
    # (v5e has no bf16 VALU/EUP; only the MXU sees low precision).
    m = jnp.max(scores, axis=-1, keepdims=True)
    e = jnp.exp(scores - m)
    denom = jnp.sum(e, axis=-1, keepdims=True)
    attn = e * pl.reciprocal(denom, approx=True)          # EUP vrcp (spare slot)

    # attn @ V on the MXU; dropout is identity in eval mode.
    out = jnp.einsum("bqk,bkv->bqv", attn.astype(v.dtype), v,
                     preferred_element_type=jnp.float32)

    if flat_out:
        # Lane-dense store: (Bt, Q, Dv) -> (Bt, Q*Dv) so the vreg->VMEM stores
        # are full 128-lane vst's instead of Dv(<128)-wide masked stores.
        out = out.reshape(out.shape[0], -1)
    out_ref[...] = out.astype(out_ref.dtype)


# ---------------------------------------------------------------------------
# Block sizing helpers
# ---------------------------------------------------------------------------
def _round_up(x, m):
    return -(-x // m) * m


def _padded_vmem_bytes(rows, cols, itemsize):
    """Bytes one (rows, cols) tile occupies in VMEM: the minor dim pads to 128
    lanes, the second-minor to the native sublane count for the dtype."""
    sublanes = 8 * max(1, 4 // itemsize)
    return _round_up(max(rows, 1), sublanes) * _round_up(max(cols, 1), 128) * itemsize


def _vmem_limit_bytes():
    """Scoped-VMEM limit to request: ~3/4 of physical VMEM (128 MiB on v5e/v6e,
    64 MiB on v7x), capped at 96 MiB.  The scoped *defaults* (16 MiB on v5e,
    32 MiB on v6e/v7x) are far below what large batch blocks need."""
    try:
        cap = int(pltpu.get_tpu_info().vmem_capacity_bytes)
    except Exception:                       # no info available -> assume smallest (v7x)
        cap = 64 * 1024 * 1024
    return min(cap * 3 // 4, 96 * 1024 * 1024)


def _largest_divisor(n, cap, multiple_of=1):
    cap = min(cap, n)
    for d in range(cap, 0, -1):
        if n % d == 0 and d % multiple_of == 0:
            return d
    return 0


def _choose_block_b(B, Q, K, D, Dv, mm_isz, out_isz, mask_rows, vmem_budget):
    """Batch-block size driven by the padded per-step VMEM footprint.

    A batched einsum does NOT fold the batch dim into the MXU M dimension, so
    growing block_b buys grid-step-overhead amortization (~0.35 us/step) and
    bigger, more efficient DMAs -- not bigger matmuls.
    """
    per_b = 2 * (_padded_vmem_bytes(Q, D, mm_isz)        # q   (double-buffered IO)
                 + _padded_vmem_bytes(K, D, mm_isz)      # k
                 + _padded_vmem_bytes(K, Dv, mm_isz)     # v
                 + _padded_vmem_bytes(Q, Dv, out_isz))   # out
    if mask_rows:
        per_b += 2 * _padded_vmem_bytes(mask_rows, K, 4)
    # ~3 live f32 (Q, K) intermediates per batch (scores / exp / attn).
    per_b += 3 * _padded_vmem_bytes(Q, K, 4)

    cap = max(1, vmem_budget // per_b)
    if cap >= B:
        bt = B
    else:
        # Prefer sublane-aligned (multiple-of-8) divisors so the flattened
        # (block_b, Q*Dv) output block stays a legal block shape.
        bt = _largest_divisor(B, cap, 8) or _largest_divisor(B, cap, 1)

    # Give the two v7x TensorCores separate steps only when each step would
    # still move >= ~1 MiB; splitting a tiny problem just doubles per-step
    # overhead (and is pure loss on single-TC v5e/v6e).
    raw_per_b = (Q * D + K * D + K * Dv) * mm_isz + Q * Dv * out_isz
    if bt == B and B > 1:
        half = _largest_divisor(B, B // 2, 8) or _largest_divisor(B, B // 2, 1)
        if half and half * raw_per_b >= (1 << 20):
            bt = half
    return bt


# ---------------------------------------------------------------------------
# Wrapper
# ---------------------------------------------------------------------------
def dot_product_attention(queries, keys, values, valid_lens=None, *,
                          block_b=None,
                          matmul_dtype=jnp.bfloat16,
                          flatten_output=True):
    """Pallas-TPU forward of d2l `DotProductAttention` (eval mode).

    queries: (B, Q, D); keys: (B, K, D); values: (B, K, Dv)
    valid_lens: None, (B,) or (B, Q)  -- d2l masked_softmax semantics.
    matmul_dtype: dtype fed to the MXU (softmax math is always f32).  bf16
      halves DMA traffic and doubles MXU rate on v6e/v7x; pass jnp.float32 for
      bit-tighter results.  (For standalone f32 inputs the wrapper-side cast
      is only a net win once it fuses into the producer of Q/K/V.)
    """
    global _FLAT_OUTPUT_OK

    B, Q, D = queries.shape
    _, K, _ = keys.shape
    Dv = values.shape[-1]
    out_dtype = queries.dtype
    scale = 1.0 / math.sqrt(D)
    masked = valid_lens is not None

    # --- dtype handling ------------------------------------------------------
    if matmul_dtype is not None and jnp.dtype(matmul_dtype) != jnp.dtype(queries.dtype):
        # Fold the 1/sqrt(d) scale into the (already required) cast: free.
        q_in = (queries * scale).astype(matmul_dtype)
        k_in = keys.astype(matmul_dtype)
        v_in = values.astype(matmul_dtype)
        kernel_scale = None
    else:
        q_in, k_in, v_in = queries, keys, values
        kernel_scale = scale
    mm_isz = jnp.dtype(q_in.dtype).itemsize
    out_isz = jnp.dtype(out_dtype).itemsize

    # --- masked-softmax mask (precomputed; specialized away when None) --------
    # The mask is built with full trailing dims ((B,1,K) or (B,Q,K)) so the
    # kernel needs no iota / rank change; cost is ~one padded (8,128) tile per
    # batch element of VMEM, negligible next to the Q/K/V tiles.
    inputs = [q_in, k_in, v_in]
    mask = None
    mask_rows = 0
    if masked:
        vl = jnp.asarray(valid_lens).astype(jnp.int32)
        col = jnp.arange(K, dtype=jnp.int32)
        if vl.ndim == 1:                                     # per-batch lengths
            mask = (col[None, None, :] < vl[:, None, None]).astype(jnp.float32)  # (B,1,K)
            mask_rows = 1
        else:                                                # per-query lengths (B,Q)
            mask = (col[None, None, :] < vl[:, :, None]).astype(jnp.float32)     # (B,Q,K)
            mask_rows = Q
        inputs.append(mask)

    # --- batch-block size & VMEM budget ---------------------------------------
    vmem_limit = _vmem_limit_bytes()
    if block_b is None:
        block_b = _choose_block_b(B, Q, K, D, Dv, mm_isz, out_isz, mask_rows,
                                  vmem_budget=(vmem_limit * 7) // 10)
    assert B % block_b == 0, "block_b must divide the batch size"
    grid = (B // block_b,)

    in_specs = [
        pl.BlockSpec((block_b, Q, D), lambda b: (b, 0, 0)),
        pl.BlockSpec((block_b, K, D), lambda b: (b, 0, 0)),
        pl.BlockSpec((block_b, K, Dv), lambda b: (b, 0, 0)),
    ]
    if masked:
        in_specs.append(pl.BlockSpec((block_b, mask_rows, K), lambda b: (b, 0, 0)))

    cost = pl.CostEstimate(
        flops=2 * B * Q * K * (D + Dv),
        transcendentals=B * Q * K,
        bytes_accessed=(q_in.size * mm_isz + k_in.size * mm_isz + v_in.size * mm_isz
                        + (mask.size * 4 if masked else 0)
                        + B * Q * Dv * out_isz),
    )
    compiler_params = pltpu.CompilerParams(
        dimension_semantics=("parallel",),
        vmem_limit_bytes=vmem_limit,
    )

    def _run(flat_out):
        if flat_out:
            out_shape = jax.ShapeDtypeStruct((B, Q * Dv), out_dtype)
            out_spec = pl.BlockSpec((block_b, Q * Dv), lambda b: (b, 0))
        else:
            out_shape = jax.ShapeDtypeStruct((B, Q, Dv), out_dtype)
            out_spec = pl.BlockSpec((block_b, Q, Dv), lambda b: (b, 0, 0))
        kernel = functools.partial(_sdpa_kernel, masked=masked,
                                   flat_out=flat_out, scale=kernel_scale)
        out = pl.pallas_call(
            kernel,
            out_shape=out_shape,
            grid_spec=pltpu.PrefetchScalarGridSpec(
                num_scalar_prefetch=0,
                grid=grid,
                in_specs=in_specs,
                out_specs=out_spec,
            ),
            compiler_params=compiler_params,
            cost_estimate=cost,
        )(*inputs)
        return out.reshape(B, Q, Dv) if flat_out else out

    # Lane-dense output store (biggest measured single lever when Dv < 128):
    # only legal when the (block_b, Q*Dv) block keeps an aligned second-minor
    # dim, and only profitable when Q*Dv is a multiple of 128.  Mosaic support
    # for the in-kernel sublane->lane flatten varies across releases/targets,
    # so fall back to the (Bt, Q, Dv) store if it fails to lower (eager calls
    # only; under jit the first successful trace is reused).
    sublane_aligned = (block_b == B) or (block_b % 8 == 0)
    if (flatten_output and sublane_aligned and (Q * Dv) % 128 == 0
            and _FLAT_OUTPUT_OK is not False):
        try:
            res = _run(flat_out=True)
            _FLAT_OUTPUT_OK = True
            return res
        except Exception:
            _FLAT_OUTPUT_OK = False
    return _run(flat_out=False)


# ---------------------------------------------------------------------------
# Pure-JAX reference (mirrors the PyTorch forward, eval mode)
# ---------------------------------------------------------------------------
def dot_product_attention_ref(queries, keys, values, valid_lens=None):
    d = queries.shape[-1]
    scores = jnp.einsum("bqd,bkd->bqk", queries, keys) / math.sqrt(d)
    if valid_lens is not None:
        vl = jnp.asarray(valid_lens)
        col = jnp.arange(scores.shape[-1])
        if vl.ndim == 1:
            m = col[None, None, :] < vl[:, None, None]
        else:
            m = col[None, None, :] < vl[:, :, None]
        scores = jnp.where(m, scores, -1e6)
    attn = jax.nn.softmax(scores, axis=-1)
    return jnp.einsum("bqk,bkv->bqv", attn, values)


if __name__ == "__main__":
    # Small shapes consistent with the module: (batch, num_queries, d) etc.
    B, Q, K = 2, 8, 8
    D, Dv = 16, 16

    key = jax.random.PRNGKey(0)
    kq, kk, kv = jax.random.split(key, 3)
    queries = jax.random.normal(kq, (B, Q, D), dtype=jnp.float32)
    keys = jax.random.normal(kk, (B, K, D), dtype=jnp.float32)
    values = jax.random.normal(kv, (B, K, Dv), dtype=jnp.float32)
    valid_lens = jnp.array([3, 6], dtype=jnp.int32)
    valid_lens_2d = jnp.array([[1, 2, 3, 4, 5, 6, 7, 8],
                               [2, 2, 4, 4, 6, 6, 8, 8]], dtype=jnp.int32)

    # f32-MXU path (bit-tight): masked, unmasked, and per-query (2-D) lengths.
    out = jax.block_until_ready(dot_product_attention(
        queries, keys, values, valid_lens, matmul_dtype=jnp.float32))
    ref = dot_product_attention_ref(queries, keys, values, valid_lens)
    assert out.shape == (B, Q, Dv)
    assert jnp.allclose(out, ref, atol=2e-3, rtol=2e-3), "f32 masked mismatch"

    out = jax.block_until_ready(dot_product_attention(
        queries, keys, values, None, matmul_dtype=jnp.float32))
    ref = dot_product_attention_ref(queries, keys, values, None)
    assert jnp.allclose(out, ref, atol=2e-3, rtol=2e-3), "f32 unmasked mismatch"

    out = jax.block_until_ready(dot_product_attention(
        queries, keys, values, valid_lens_2d, matmul_dtype=jnp.float32))
    ref = dot_product_attention_ref(queries, keys, values, valid_lens_2d)
    assert jnp.allclose(out, ref, atol=2e-3, rtol=2e-3), "f32 2-D valid_lens mismatch"

    # Default bf16-MXU path (softmax still f32): looser tolerance.
    out = jax.block_until_ready(dot_product_attention(
        queries, keys, values, valid_lens))
    ref = dot_product_attention_ref(queries, keys, values, valid_lens)
    assert jnp.allclose(out, ref, atol=5e-2, rtol=5e-2), "bf16 masked mismatch"

    print("KERNEL_OK")
</pallas_src>

<mosaic_0001>
module attributes {stable_mosaic.version = 11 : i64} {
  func.func @_sdpa_kernel(%arg0: i32, %arg1: memref<2x8x16xf32, #tpu.memory_space<vmem>>, %arg2: memref<2x8x16xf32, #tpu.memory_space<vmem>>, %arg3: memref<2x8x16xf32, #tpu.memory_space<vmem>>, %arg4: memref<2x1x8xf32, #tpu.memory_space<vmem>>, %arg5: memref<2x128xf32, #tpu.memory_space<vmem>>) attributes {dimension_semantics = [#tpu.dimension_semantics<parallel>], iteration_bounds = array<i64: 1>, scalar_prefetch = 0 : i64, scratch_operands = 0 : i64, tpu.core_type = #tpu.core_type<tc>, window_params = [{transform_indices = @transform_0, window_bounds = array<i64: 2, 8, 16>}, {transform_indices = @transform_1, window_bounds = array<i64: 2, 8, 16>}, {transform_indices = @transform_2, window_bounds = array<i64: 2, 8, 16>}, {transform_indices = @transform_3, window_bounds = array<i64: 2, 1, 8>}, {transform_indices = @transform_4, window_bounds = array<i64: 2, 128>}]} {
    %c0 = arith.constant 0 : index
    %c0_0 = arith.constant 0 : index
    %c0_1 = arith.constant 0 : index
    %0 = vector.load %arg1[%c0, %c0_0, %c0_1] : memref<2x8x16xf32, #tpu.memory_space<vmem>>, vector<2x8x16xf32>
    %c0_2 = arith.constant 0 : index
    %c0_3 = arith.constant 0 : index
    %c0_4 = arith.constant 0 : index
    %1 = vector.load %arg2[%c0_2, %c0_3, %c0_4] : memref<2x8x16xf32, #tpu.memory_space<vmem>>, vector<2x8x16xf32>
    %c0_5 = arith.constant 0 : index
    %c0_6 = arith.constant 0 : index
    %c0_7 = arith.constant 0 : index
    %2 = vector.load %arg3[%c0_5, %c0_6, %c0_7] : memref<2x8x16xf32, #tpu.memory_space<vmem>>, vector<2x8x16xf32>
    %cst = arith.constant 2.500000e-01 : f32
    %3 = vector.broadcast %cst : f32 to vector<2x8x16xf32>
    %4 = arith.mulf %0, %3 : vector<2x8x16xf32>
    "tpu.trace_start"() <{level = 10 : i32, message = "bqd,bkd->bqk"}> : () -> ()
    %cst_8 = arith.constant dense<0.000000e+00> : vector<2x8x8xf32>
    %5 = tpu.matmul %4, %1, %cst_8 {dimension_numbers = #tpu.dot_dimension_numbers<[2], [2], [1], [1], [0, 0, 0, 1, 1, 1], [0], [0]>} : vector<2x8x16xf32>, vector<2x8x16xf32>, vector<2x8x8xf32> -> vector<2x8x8xf32>
    "tpu.trace_stop"() : () -> ()
    %c0_9 = arith.constant 0 : index
    %c0_10 = arith.constant 0 : index
    %c0_11 = arith.constant 0 : index
    %6 = vector.load %arg4[%c0_9, %c0_10, %c0_11] : memref<2x1x8xf32, #tpu.memory_space<vmem>>, vector<2x1x8xf32>
    %cst_12 = arith.constant 5.000000e-01 : f32
    %7 = vector.broadcast %cst_12 : f32 to vector<2x1x8xf32>
    %8 = arith.cmpf ogt, %6, %7 : vector<2x1x8xf32>
    %cst_13 = arith.constant -1.000000e+06 : f32
    %9 = vector.shape_cast %8 : vector<2x1x8xi1> to vector<2x1x8xi1>
    %10 = vector.broadcast %9 : vector<2x1x8xi1> to vector<2x8x8xi1>
    %11 = vector.broadcast %cst_13 : f32 to vector<2x8x8xf32>
    %12 = arith.select %10, %5, %11 : vector<2x8x8xi1>, vector<2x8x8xf32>
    %cst_14 = arith.constant dense<0xFF800000> : vector<2x8xf32>
    %13 = vector.multi_reduction <maximumf>, %12, %cst_14 [2] : vector<2x8x8xf32> to vector<2x8xf32>
    %14 = vector.shape_cast %13 : vector<2x8xf32> to vector<2x8x1xf32>
    %15 = vector.broadcast %14 : vector<2x8x1xf32> to vector<2x8x8xf32>
    %16 = arith.subf %12, %15 : vector<2x8x8xf32>
    %17 = math.exp %16 : vector<2x8x8xf32>
    %cst_15 = arith.constant dense<0.000000e+00> : vector<2x8xf32>
    %18 = vector.multi_reduction <add>, %17, %cst_15 [2] : vector<2x8x8xf32> to vector<2x8xf32>
    %19 = vector.shape_cast %18 : vector<2x8xf32> to vector<2x8x1xf32>
    %20 = tpu.reciprocal %19 {approx = true} : vector<2x8x1xf32> -> vector<2x8x1xf32>
    %21 = vector.broadcast %20 : vector<2x8x1xf32> to vector<2x8x8xf32>
    %22 = arith.mulf %17, %21 : vector<2x8x8xf32>
    "tpu.trace_start"() <{level = 10 : i32, message = "bqk,bkv->bqv"}> : () -> ()
    %cst_16 = arith.constant dense<0.000000e+00> : vector<2x8x16xf32>
    %23 = tpu.matmul %22, %2, %cst_16 {dimension_numbers = #tpu.dot_dimension_numbers<[2], [1], [1], [2], [0, 0, 0, 1, 1, 2], [0], [0]>} : vector<2x8x8xf32>, vector<2x8x16xf32>, vector<2x8x16xf32> -> vector<2x8x16xf32>
    "tpu.trace_stop"() : () -> ()
    %24 = vector.shape_cast %23 : vector<2x8x16xf32> to vector<2x128xf32>
    %c0_17 = arith.constant 0 : index
    %c0_18 = arith.constant 0 : index
    %25 = vector.load %arg5[%c0_17, %c0_18] : memref<2x128xf32, #tpu.memory_space<vmem>>, vector<2x128xf32>
    tpu.vector_store %arg5[%c0_17, %c0_18], %24 {strides = array<i32>} : memref<2x128xf32, #tpu.memory_space<vmem>>, vector<2x128xf32>,
    return
  }
  func.func @transform_0(%arg0: i32) -> (i32, i32, i32) {
    %c0_i32 = arith.constant 0 : i32
    %c0_i32_0 = arith.constant 0 : i32
    %c0_i32_1 = arith.constant 0 : i32
    return %arg0, %c0_i32, %c0_i32_0 : i32, i32, i32
  }
  func.func @transform_1(%arg0: i32) -> (i32, i32, i32) {
    %c0_i32 = arith.constant 0 : i32
    %c0_i32_0 = arith.constant 0 : i32
    %c0_i32_1 = arith.constant 0 : i32
    return %arg0, %c0_i32, %c0_i32_0 : i32, i32, i32
  }
  func.func @transform_2(%arg0: i32) -> (i32, i32, i32) {
    %c0_i32 = arith.constant 0 : i32
    %c0_i32_0 = arith.constant 0 : i32
    %c0_i32_1 = arith.constant 0 : i32
    return %arg0, %c0_i32, %c0_i32_0 : i32, i32, i32
  }
  func.func @transform_3(%arg0: i32) -> (i32, i32, i32) {
    %c0_i32 = arith.constant 0 : i32
    %c0_i32_0 = arith.constant 0 : i32
    %c0_i32_1 = arith.constant 0 : i32
    return %arg0, %c0_i32, %c0_i32_0 : i32, i32, i32
  }
  func.func @transform_4(%arg0: i32) -> (i32, i32) {
    %c0_i32 = arith.constant 0 : i32
    %c0_i32_0 = arith.constant 0 : i32
    return %arg0, %c0_i32 : i32, i32
  }
}

module attributes {stable_mosaic.version = 11 : i64} {
  func.func @_sdpa_kernel(%arg0: i32, %arg1: memref<2x8x16xf32, #tpu.memory_space<vmem>>, %arg2: memref<2x8x16xf32, #tpu.memory_space<vmem>>, %arg3: memref<2x8x16xf32, #tpu.memory_space<vmem>>, %arg4: memref<2x1x8xf32, #tpu.memory_space<vmem>>, %arg5: memref<2x8x16xf32, #tpu.memory_space<vmem>>) attributes {dimension_semantics = [#tpu.dimension_semantics<parallel>], iteration_bounds = array<i64: 1>, scalar_prefetch = 0 : i64, scratch_operands = 0 : i64, tpu.core_type = #tpu.core_type<tc>, window_params = [{transform_indices = @transform_0, window_bounds = array<i64: 2, 8, 16>}, {transform_indices = @transform_1, window_bounds = array<i64: 2, 8, 16>}, {transform_indices = @transform_2, window_bounds = array<i64: 2, 8, 16>}, {transform_indices = @transform_3, window_bounds = array<i64: 2, 1, 8>}, {transform_indices = @transform_4, window_bounds = array<i64: 2, 8, 16>}]} {
    %c0 = arith.constant 0 : index
    %c0_0 = arith.constant 0 : index
    %c0_1 = arith.constant 0 : index
    %0 = vector.load %arg1[%c0, %c0_0, %c0_1] : memref<2x8x16xf32, #tpu.memory_space<vmem>>, vector<2x8x16xf32>
    %c0_2 = arith.constant 0 : index
    %c0_3 = arith.constant 0 : index
    %c0_4 = arith.constant 0 : index
    %1 = vector.load %arg2[%c0_2, %c0_3, %c0_4] : memref<2x8x16xf32, #tpu.memory_space<vmem>>, vector<2x8x16xf32>
    %c0_5 = arith.constant 0 : index
    %c0_6 = arith.constant 0 : index
    %c0_7 = arith.constant 0 : index
    %2 = vector.load %arg3[%c0_5, %c0_6, %c0_7] : memref<2x8x16xf32, #tpu.memory_space<vmem>>, vector<2x8x16xf32>
    %cst = arith.constant 2.500000e-01 : f32
    %3 = vector.broadcast %cst : f32 to vector<2x8x16xf32>
    %4 = arith.mulf %0, %3 : vector<2x8x16xf32>
    "tpu.trace_start"() <{level = 10 : i32, message = "bqd,bkd->bqk"}> : () -> ()
    %cst_8 = arith.constant dense<0.000000e+00> : vector<2x8x8xf32>
    %5 = tpu.matmul %4, %1, %cst_8 {dimension_numbers = #tpu.dot_dimension_numbers<[2], [2], [1], [1], [0, 0, 0, 1, 1, 1], [0], [0]>} : vector<2x8x16xf32>, vector<2x8x16xf32>, vector<2x8x8xf32> -> vector<2x8x8xf32>
    "tpu.trace_stop"() : () -> ()
    %c0_9 = arith.constant 0 : index
    %c0_10 = arith.constant 0 : index
    %c0_11 = arith.constant 0 : index
    %6 = vector.load %arg4[%c0_9, %c0_10, %c0_11] : memref<2x1x8xf32, #tpu.memory_space<vmem>>, vector<2x1x8xf32>
    %cst_12 = arith.constant 5.000000e-01 : f32
    %7 = vector.broadcast %cst_12 : f32 to vector<2x1x8xf32>
    %8 = arith.cmpf ogt, %6, %7 : vector<2x1x8xf32>
    %cst_13 = arith.constant -1.000000e+06 : f32
    %9 = vector.shape_cast %8 : vector<2x1x8xi1> to vector<2x1x8xi1>
    %10 = vector.broadcast %9 : vector<2x1x8xi1> to vector<2x8x8xi1>
    %11 = vector.broadcast %cst_13 : f32 to vector<2x8x8xf32>
    %12 = arith.select %10, %5, %11 : vector<2x8x8xi1>, vector<2x8x8xf32>
    %cst_14 = arith.constant dense<0xFF800000> : vector<2x8xf32>
    %13 = vector.multi_reduction <maximumf>, %12, %cst_14 [2] : vector<2x8x8xf32> to vector<2x8xf32>
    %14 = vector.shape_cast %13 : vector<2x8xf32> to vector<2x8x1xf32>
    %15 = vector.broadcast %14 : vector<2x8x1xf32> to vector<2x8x8xf32>
    %16 = arith.subf %12, %15 : vector<2x8x8xf32>
    %17 = math.exp %16 : vector<2x8x8xf32>
    %cst_15 = arith.constant dense<0.000000e+00> : vector<2x8xf32>
    %18 = vector.multi_reduction <add>, %17, %cst_15 [2] : vector<2x8x8xf32> to vector<2x8xf32>
    %19 = vector.shape_cast %18 : vector<2x8xf32> to vector<2x8x1xf32>
    %20 = tpu.reciprocal %19 {approx = true} : vector<2x8x1xf32> -> vector<2x8x1xf32>
    %21 = vector.broadcast %20 : vector<2x8x1xf32> to vector<2x8x8xf32>
    %22 = arith.mulf %17, %21 : vector<2x8x8xf32>
    "tpu.trace_start"() <{level = 10 : i32, message = "bqk,bkv->bqv"}> : () -> ()
    %cst_16 = arith.constant dense<0.000000e+00> : vector<2x8x16xf32>
    %23 = tpu.matmul %22, %2, %cst_16 {dimension_numbers = #tpu.dot_dimension_numbers<[2], [1], [1], [2], [0, 0, 0, 1, 1, 2], [0], [0]>} : vector<2x8x8xf32>, vector<2x8x16xf32>, vector<2x8x16xf32> -> vector<2x8x16xf32>
    "tpu.trace_stop"() : () -> ()
    %c0_17 = arith.constant 0 : index
    %c0_18 = arith.constant 0 : index
    %c0_19 = arith.constant 0 : index
    %24 = vector.load %arg5[%c0_17, %c0_18, %c0_19] : memref<2x8x16xf32, #tpu.memory_space<vmem>>, vector<2x8x16xf32>
    tpu.vector_store %arg5[%c0_17, %c0_18, %c0_19], %23 {strides = array<i32>} : memref<2x8x16xf32, #tpu.memory_space<vmem>>, vector<2x8x16xf32>,
    return
  }
  func.func @transform_0(%arg0: i32) -> (i32, i32, i32) {
    %c0_i32 = arith.constant 0 : i32
    %c0_i32_0 = arith.constant 0 : i32
    %c0_i32_1 = arith.constant 0 : i32
    return %arg0, %c0_i32, %c0_i32_0 : i32, i32, i32
  }
  func.func @transform_1(%arg0: i32) -> (i32, i32, i32) {
    %c0_i32 = arith.constant 0 : i32
    %c0_i32_0 = arith.constant 0 : i32
    %c0_i32_1 = arith.constant 0 : i32
    return %arg0, %c0_i32, %c0_i32_0 : i32, i32, i32
  }
  func.func @transform_2(%arg0: i32) -> (i32, i32, i32) {
    %c0_i32 = arith.constant 0 : i32
    %c0_i32_0 = arith.constant 0 : i32
    %c0_i32_1 = arith.constant 0 : i32
    return %arg0, %c0_i32, %c0_i32_0 : i32, i32, i32
  }
  func.func @transform_3(%arg0: i32) -> (i32, i32, i32) {
    %c0_i32 = arith.constant 0 : i32
    %c0_i32_0 = arith.constant 0 : i32
    %c0_i32_1 = arith.constant 0 : i32
    return %arg0, %c0_i32, %c0_i32_0 : i32, i32, i32
  }
  func.func @transform_4(%arg0: i32) -> (i32, i32, i32) {
    %c0_i32 = arith.constant 0 : i32
    %c0_i32_0 = arith.constant 0 : i32
    %c0_i32_1 = arith.constant 0 : i32
    return %arg0, %c0_i32, %c0_i32_0 : i32, i32, i32
  }
}

</mosaic_0001>

<bundles_post_ra>
// kernel: tpu_custom_call.1
= control target key start
LH: loop header
LB: loop body
LE: loop exit
PB: predicated region body
PF: predicated region fallthrough
CT: control target
= control target key end

     0   :  { %9 = vsyncpa [#allocation3], 0  ;;  %s827_s0 = inlined_call_operand.hbm [shape: f32[2,8,16], index: 0, kind: input, shape index: {}]   ;;  %s828_s1 = inlined_call_operand.hbm [shape: f32[2,8,16], index: 1, kind: input, shape index: {}]   ;;  %s829_s2 = inlined_call_operand.hbm [shape: f32[2,8,16], index: 2, kind: input, shape index: {}]   ;;  %s830_s3 = inlined_call_operand.vmem [shape: f32[2,1,8], index: 3, kind: input, shape index: {}]   ;;  %s831_s4 = inlined_call_operand.hbm [shape: f32[2,128], index: 4, kind: output, shape index: {}]  }
   0x1   :  { %10 = vsyncpa [#allocation6], 0 }
   0x2   :  { %11 = vsyncpa [#allocation4], 0  ;;  %s685_s15 = smov [#allocation5]   ;;  %s686_s17 = smov [#allocation2]  }
   0x3   :  { %s29_s16 = sshll.u32 %s685_s15, 4  ;;  %s17_s18 = sshll.u32 %s686_s17, 4  ;;  %s30_s16 = int_to_ptr.vmem [resolvable:$true] %s29_s16  ;;  %s728_s18 = int_to_ptr.vmem [resolvable:$true] %s17_s18 }
   0x4   :  { %s591_s21 = scalar_lea.hbm %s828_s1, 256 }
   0x5   :  { %p592_p0 = scmp.ne.s32.totalorder %s828_s1, %s591_s21  ;;  %p595_p1 = scmp.lt.u32.totalorder %s591_s21, %s828_s1 }
   0x7   :  { %p597_p2 = pnand %p595_p1, %p592_p0 }
   0x9   :  { %600 = shalt.err (!%p597_p2)
}
   0xa   :  { %s601_s26 = scalar_lea.vmem %s30_s16, 256  ;;  %p606_p4 = scmp.lt.s32.totalorder %s30_s16, %s30_s16 }
   0xb   :  { %p602_p3 = scmp.ne.s32.totalorder %s30_s16, %s601_s26  ;;  %p607_p5 = scmp.lt.s32.totalorder %s601_s26, %s601_s26 }
   0xd   :  { %p608_p6 = por %p607_p5, %p606_p4 }
   0xf   :  { %p609_p7 = pnand %p608_p6, %p602_p3 }
  0x11   :  { %612 = shalt.err (!%p609_p7)
}
  0x12   :  { %s687_s27 = smov 128   ;;  %s688_s28 = smov 8  }
  0x13   :  { %35 = dma.hbm_to_vmem [thread:$0]  %s828_s1, 256, %s30_s16, [#allocation6], %s687_s27, %s687_s27, %s688_s28  }
  0x14   :  { %s613_s7 = scalar_lea.hbm %s827_s0, 256 }
  0x15   :  { %p614_p8 = scmp.ne.s32.totalorder %s827_s0, %s613_s7  ;;  %p617_p9 = scmp.lt.u32.totalorder %s613_s7, %s827_s0 }
  0x17   :  { %p619_p10 = pnand %p617_p9, %p614_p8 }
  0x19   :  { %622 = shalt.err (!%p619_p10)
}
  0x1a   :  { %s623_s12 = scalar_lea.vmem %s728_s18, 256  ;;  %p628_p12 = scmp.lt.s32.totalorder %s728_s18, %s728_s18 }
  0x1b   :  { %p624_p11 = scmp.ne.s32.totalorder %s728_s18, %s623_s12  ;;  %p629_p13 = scmp.lt.s32.totalorder %s623_s12, %s623_s12 }
  0x1d   :  { %p630_p0 = por %p629_p13, %p628_p12 }
  0x1f   :  { %p631_p1 = pnand %p630_p0, %p624_p11 }
  0x21   :  { %634 = shalt.err (!%p631_p1)
}
  0x22   :  { %23 = dma.hbm_to_vmem [thread:$0]  %s827_s0, 256, %s728_s18, [#allocation3], %s687_s27, %s687_s27, %s688_s28  }
  0x23   :  { %s689_s14 = smov [#allocation7]   ;;  %s635_s19 = scalar_lea.hbm %s829_s2, 256 }
  0x24   :  { %s41_s15 = sshll.u32 %s689_s14, 4  ;;  %p636_p2 = scmp.ne.s32.totalorder %s829_s2, %s635_s19  ;;  %s42_s15 = int_to_ptr.vmem [resolvable:$true] %s41_s15 }
  0x25   :  { %p639_p3 = scmp.lt.u32.totalorder %s635_s19, %s829_s2 }
  0x27   :  { %p641_p4 = pnand %p639_p3, %p636_p2 }
  0x29   :  { %644 = shalt.err (!%p641_p4)
}
  0x2a   :  { %s645_s24 = scalar_lea.vmem %s42_s15, 256  ;;  %p650_p6 = scmp.lt.s32.totalorder %s42_s15, %s42_s15 }
  0x2b   :  { %p646_p5 = scmp.ne.s32.totalorder %s42_s15, %s645_s24  ;;  %p651_p7 = scmp.lt.s32.totalorder %s645_s24, %s645_s24 }
  0x2d   :  { %p652_p8 = por %p651_p7, %p650_p6 }
  0x2f   :  { %p653_p9 = pnand %p652_p8, %p646_p5 }
  0x31   :  { %656 = shalt.err (!%p653_p9)
}
  0x32   :  { %47 = dma.hbm_to_vmem [thread:$0]  %s829_s2, 256, %s42_s15, [#allocation6], %s687_s27, %s687_s27, %s688_s28  }
  0x33   :  { %679 = dma.done.wait [#allocation3], 256  }
  0x34   :  { %680 = vsyncadd [#allocation3], 4294967040 }
  0x35   :  { %681 = dma.done.wait [#allocation6], 512  }
  0x36   :  { %682 = vsyncadd [#allocation6], 4294966784  ;;  %v690_v0 = vmov 0.0   ;;  %vm691_vm0 = vmmov 0   ;;  %vm67_vm1 = vcmask 130048   ;;  %v61_v1 = vld [vmem:[#allocation5] sm:$0xff]  ;;  %v226_v7 = vlaneseq }
  0x37   :  { %545 = vmatprep.subr.mxu0 %v690_v0  ;;  %547 = vmatprep.mubr.msk.f32.mxu0 %vm691_vm0, %v690_v0  ;;  %v59_v2 = vld [vmem:[#allocation2] sm:$0xff]  ;;  %v62_v3 = vld [vmem:[#allocation5 + $0x8] sm:$0xff]  ;;  %v60_v5 = vld [vmem:[#allocation2 + $0x8] sm:$0xff]  ;;  %v692_v12 = vmov 0   ;;  %vm238_vm6 = vcmask 64512   ;;  %s696_s28 = smov 16  }
  0x38   :  { %550 = vmatprep.subr.mxu1 %v690_v0  ;;  %552 = vmatprep.mubr.msk.f32.mxu1 %vm691_vm0, %v690_v0  ;;  %v65_v4 = vmul.f32 0.25, %v59_v2  ;;  %v66_v6 = vmul.f32 0.25, %v60_v5  ;;  %v220_v8 = vld [vmem:[%s830_s3] sm:$0x1]  ;;  %v221_v9 = vld [vmem:[%s830_s3 + $0x1] sm:$0x1] }
  0x39   :  { %546 = vmatpush3.xpose.msk.msra.mxu0 %vm67_vm1, %v61_v1  ;;  %551 = vmatpush3.xpose.msk.msra.mxu1 %vm67_vm1, %v62_v3  ;;  %v227_v10 = vshrl.u32 %v226_v7, 7  ;;  %vm222_vm2 = vcmp.gt.f32.partialorder %v220_v8, 0.5  ;;  %vm223_vm3 = vcmp.gt.f32.partialorder %v221_v9, 0.5  ;;  %v63_v35 = vld [vmem:[#allocation7] sm:$0xff]  ;;  %v64_v36 = vld [vmem:[#allocation7 + $0x8] sm:$0xff]  ;;  %s695_s3 = smov 32  }
  0x3a   :  { %555 = vmatprep.subr.mxu0 %v690_v0  ;;  %560 = vmatprep.subr.mxu1 %v690_v0  ;;  %v224_v13 = vsel %vm222_vm2, 1, %v692_v12  ;;  %v225_v14 = vsel %vm223_vm3, 1, %v692_v12  ;;  %v693_v43 = vmov 1983009808   ;;  %v694_v45 = vmov 1934713408  }
  0x3b   :  { %v228_v11 = vsub.s32 0, %v227_v10  ;;  %v409_v44 = vunpack.c.l.s4 %v693_v43  ;;  %v440_v46 = vunpack.c.l.s4 %v694_v45  ;;  %s697_s29 = smov 48   ;;  %s698_s30 = smov 80   ;;  %vm502_vm7 = vcmask 261120  }
  0x3c   :  { %548 = vmatmul.mubr.msk.f32.vlgmr.msra.gmra.mrb[0].mxu0 %vm67_vm1, %v65_v4  ;;  %553 = vmatmul.mubr.msk.f32.vlgmr.msra.gmra.mrb[0].mxu1 %vm67_vm1, %v66_v6  ;;  %s699_s5 = smov 64   ;;  %s700_s6 = smov 112   ;;  %vm504_vm8 = vcmask 392192   ;;  %vm506_vm9 = vcmask 523264   ;;  %vm508_vm10 = vcmask 654336   ;;  %vm510_vm11 = vcmask 785408  }
  0x3d   :  { %557 = vmatprep.mubr.msk.f32.mxu0 %vm691_vm0, %v690_v0  ;;  %562 = vmatprep.mubr.msk.f32.mxu1 %vm691_vm0, %v690_v0  ;;  %v229_v15 = vrot.slane %v224_v13, %v228_v11  ;;  %v233_v16 = vrot.slane %v225_v14, %v228_v11  ;;  %v410_v47 = vunpack.c.0.s8 %v409_v44  ;;  %v441_v49 = vunpack.c.0.s8 %v440_v46  ;;  %s701_s7 = smov 96   ;;  %s702_s8 = smov [#allocation8]  }
  0x3e   :  { %556 = vmatpush3.msra.mxu0 %v63_v35  ;;  %561 = vmatpush3.msra.mxu1 %v64_v36  ;;  %s521_s9 = sshll.u32 %s702_s8, 4  ;;  %vm512_vm12 = vcmask 916480   ;;  %s522_s9 = int_to_ptr.vmem [resolvable:$true] %s521_s9 }
  0x3f   :  { %vm234_vm4 = vcmp.eq.s32.totalorder %v229_v15, 1  ;;  %vm235_vm5 = vcmp.eq.s32.totalorder %v233_v16, 1  ;;  %v413_v50 = vsub.s32 %v410_v47, %v227_v10  ;;  %v444_v54 = vsub.s32 %v441_v49, %v227_v10  ;;  %s657_s10 = scalar_lea.vmem %s522_s9, 32  ;;  %p662_p11 = scmp.lt.s32.totalorder %s522_s9, %s522_s9 }
  0x40   :  { %p658_p10 = scmp.ne.s32.totalorder %s522_s9, %s657_s10  ;;  %p663_p12 = scmp.lt.s32.totalorder %s657_s10, %s657_s10 }
  0x42   :  { %p664_p13 = por %p663_p12, %p662_p11 }
  0x44   :  { %p665_p0 = pnand %p664_p13, %p658_p10 }
 0x10f   :  { %v140_v17 = vpop.f32.mrb[0].mxu0  ;;  %v216_v18 = vpop.f32.mrb[0].mxu1 }
 0x110   :  { %v236_v19 = vsel %vm234_vm4, %v140_v17, -1000000.0  ;;  %v549_v20 = vpop.f32.mrb[1].mxu0  ;;  %v237_v21 = vsel %vm235_vm5, %v216_v18, -1000000.0  ;;  %v554_v22 = vpop.f32.mrb[1].mxu1 }
 0x111   :  { %v239_v23 = vsel %vm238_vm6, %v236_v19, -inf  ;;  %v242_v24 = vsel %vm238_vm6, %v237_v21, -inf }
 0x112   :  { %240 = vmax.xlane.f32.xlu0 %v239_v23 }
 0x116   :  { %243 = vmax.xlane.f32.xlu0 %v242_v24 }
 0x19f   :  { %v241_v25 = vpop.xlane.xlu0 %240 }
 0x1a0   :  { %v245_v26 = vsub.f32 %v236_v19, %v241_v25 }
 0x1a2   :  { %v247_v27 = vmul.f32 1.442695, %v245_v26 }
 0x1a3   :  { %v244_v28 = vpop.xlane.xlu0 %243 }
 0x1a4   :  { %583 = vpow2.f32 %v247_v27  ;;  %v246_v29 = vsub.f32 %v237_v21, %v244_v28 }
 0x1a6   :  { %v249_v30 = vmul.f32 1.442695, %v246_v29 }
 0x1a8   :  { %585 = vpow2.f32 %v249_v30 }
 0x1ae   :  { %v584_v31 = vpop.eup %583 }
 0x1af   :  { %v251_v32 = vsel %vm238_vm6, %v584_v31, 0.0 }
 0x1b0   :  { %252 = vadd.xlane.f32.xlu1 %v251_v32 }
 0x1b2   :  { %v586_v33 = vpop.eup %585 }
 0x1b3   :  { %v254_v34 = vsel %vm238_vm6, %v586_v33, 0.0 }
 0x1b4   :  { %255 = vadd.xlane.f32.xlu1 %v254_v34 }
 0x23d   :  { %v253_v37 = vpop.xlane.xlu1 %252 }
 0x23e   :  { %587 = vrcp.f32 %v253_v37 }
 0x241   :  { %v256_v38 = vpop.xlane.xlu1 %255 }
 0x242   :  { %589 = vrcp.f32 %v256_v38 }
 0x248   :  { %v588_v39 = vpop.eup %587 }
 0x249   :  { %v259_v40 = vmul.f32 %v588_v39, %v584_v31 }
 0x24b   :  { %558 = vmatmul.mubr.msk.f32.vlgmr.msra.gmra.mrb[2].mxu0 %vm238_vm6, %v259_v40 }
 0x24c   :  { %v590_v41 = vpop.eup %589 }
 0x24d   :  { %v260_v42 = vmul.f32 %v590_v41, %v586_v33 }
 0x24f   :  { %563 = vmatmul.mubr.msk.f32.vlgmr.msra.gmra.mrb[2].mxu1 %vm238_vm6, %v260_v42 }
 0x31e   :  { %v330_v48 = vpop.f32.mrb[2].mxu0 }
 0x31f   :  { %v559_v51 = vpop.f32.mrb[3].mxu0  ;;  %v407_v52 = vcombine.high %v330_v48, %v690_v0  ;;  %v414_v55 = vrot.slane %v330_v48, %v413_v50 }
 0x321   :  { %v421_v59 = vrot.slane %v407_v52, %v413_v50 }
 0x322   :  { %v403_v53 = vpop.f32.mrb[2].mxu1 }
 0x323   :  { %v422_v56 = vcombine.high %v403_v53, %v690_v0  ;;  %v429_v57 = vrot.slane %v403_v53, %v413_v50  ;;  %v564_v58 = vpop.f32.mrb[3].mxu1 }
 0x325   :  { %v436_v60 = vrot.slane %v422_v56, %v413_v50  ;;  %v437_v61 = vcombine.low %v414_v55, %v429_v57  ;;  %v438_v62 = vcombine.high %v414_v55, %v429_v57 }
 0x327   :  { %v445_v63 = vrot.slane %v437_v61, %v444_v54  ;;  %v453_v1 = vcombine.low %v421_v59, %v436_v60  ;;  %v454_v2 = vcombine.high %v421_v59, %v436_v60  ;;  %v452_v3 = vrot.slane %v438_v62, %v444_v54 }
 0x329   :  { %478 = vrot.lane.b32.xlu1 %v452_v3, %s695_s3  ;;  %v469_v4 = vcombine.high %v445_v63, %v690_v0  ;;  %v461_v5 = vrot.slane %v453_v1, %v444_v54  ;;  %v470_v6 = vcombine.high %v452_v3, %v690_v0  ;;  %v468_v8 = vrot.slane %v454_v2, %v444_v54 }
 0x32b   :  { %474 = vrot.lane.b32.xlu0 %v469_v4, %s696_s28  ;;  %v471_v7 = vcombine.high %v461_v5, %v690_v0  ;;  %v472_v9 = vcombine.high %v468_v8, %v690_v0 }
 0x32d   :  { %482 = vrot.lane.b32.xlu1 %v470_v6, %s697_s29 }
 0x32f   :  { %490 = vrot.lane.b32.xlu0 %v471_v7, %s698_s30 }
 0x331   :  { %486 = vrot.lane.b32.xlu1 %v461_v5, %s699_s5 }
 0x333   :  { %498 = vrot.lane.b32.xlu0 %v472_v9, %s700_s6 }
 0x335   :  { %494 = vrot.lane.b32.xlu1 %v468_v8, %s701_s7 }
 0x39b   :  { %v479_v10 = vpop.permute.xlu1 %478 }
 0x39d   :  { %v475_v11 = vpop.permute.xlu0 %474 }
 0x39e   :  { %v501_v12 = vsel %vm67_vm1, %v445_v63, %v475_v11 }
 0x39f   :  { %v483_v13 = vpop.permute.xlu1 %482  ;;  %v503_v14 = vsel %vm502_vm7, %v501_v12, %v479_v10 }
 0x3a0   :  { %v505_v16 = vsel %vm504_vm8, %v503_v14, %v483_v13 }
 0x3a1   :  { %v491_v15 = vpop.permute.xlu0 %490 }
 0x3a3   :  { %v487_v17 = vpop.permute.xlu1 %486 }
 0x3a4   :  { %v507_v18 = vsel %vm506_vm9, %v505_v16, %v487_v17 }
 0x3a5   :  { %v509_v19 = vsel %vm508_vm10, %v507_v18, %v491_v15  ;;  %v499_v20 = vpop.permute.xlu0 %498 }
 0x3a7   :  { %v495_v0 = vpop.permute.xlu1 %494 }
 0x3a8   :  { %v511_v21 = vsel %vm510_vm11, %v509_v19, %v495_v0 }
 0x3a9   :  { %v513_v22 = vsel %vm512_vm12, %v511_v21, %v499_v20 }
 0x3aa   :  { %514 = vst [vmem:[#allocation8] sm:$0x3] %v513_v22 }
 0x3ab   :  { %668 = shalt.err (!%p665_p0)
}
 0x3ac   :  { %s669_s1 = scalar_lea.hbm %s831_s4, 32 }
 0x3ad   :  { %p670_p1 = scmp.ne.s32.totalorder %s831_s4, %s669_s1  ;;  %p673_p2 = scmp.lt.u32.totalorder %s669_s1, %s831_s4 }
 0x3af   :  { %p675_p3 = pnand %p673_p2, %p670_p1 }
 0x3b1   :  { %678 = shalt.err (!%p675_p3)
}
 0x3b2   :  { %524 = dma.vmem_to_hbm [thread:$0]  %s522_s9, 32, %s831_s4, [#allocation4]  }
 0x3b3   :  { %683 = dma.done.wait [#allocation4], 32  }
 0x3b4   :  { %684 = vsyncadd [#allocation4], 4294967264 }
 0x3b5   :  { %528 = vsyncpa [#allocation3], 1 }
 0x3b6   :  { %529 = vsyncpa [#allocation6], 1 }
 0x3b7   :  { %530 = vsyncpa [#allocation4], 1 }

// kernel: tpu_custom_call.1
= control target key start
LH: loop header
LB: loop body
LE: loop exit
PB: predicated region body
PF: predicated region fallthrough
CT: control target
= control target key end

     0   :  { %9 = vsyncpa [#allocation3], 0  ;;  %s695_s0 = inlined_call_operand.hbm [shape: f32[2,8,16], index: 0, kind: input, shape index: {}]   ;;  %s696_s1 = inlined_call_operand.hbm [shape: f32[2,8,16], index: 1, kind: input, shape index: {}]   ;;  %s697_s2 = inlined_call_operand.hbm [shape: f32[2,8,16], index: 2, kind: input, shape index: {}]   ;;  %s698_s3 = inlined_call_operand.vmem [shape: f32[2,1,8], index: 3, kind: input, shape index: {}]   ;;  %s699_s4 = inlined_call_operand.hbm [shape: f32[2,8,16], index: 4, kind: output, shape index: {}]  }
   0x1   :  { %10 = vsyncpa [#allocation6], 0 }
   0x2   :  { %11 = vsyncpa [#allocation4], 0  ;;  %s572_s15 = smov [#allocation5]   ;;  %s573_s17 = smov [#allocation2]  }
   0x3   :  { %s29_s16 = sshll.u32 %s572_s15, 4  ;;  %s17_s18 = sshll.u32 %s573_s17, 4  ;;  %s30_s16 = int_to_ptr.vmem [resolvable:$true] %s29_s16  ;;  %s606_s18 = int_to_ptr.vmem [resolvable:$true] %s17_s18 }
   0x4   :  { %s478_s21 = scalar_lea.hbm %s696_s1, 256 }
   0x5   :  { %p479_p0 = scmp.ne.s32.totalorder %s696_s1, %s478_s21  ;;  %p482_p1 = scmp.lt.u32.totalorder %s478_s21, %s696_s1 }
   0x7   :  { %p484_p2 = pnand %p482_p1, %p479_p0 }
   0x9   :  { %487 = shalt.err (!%p484_p2)
}
   0xa   :  { %s488_s26 = scalar_lea.vmem %s30_s16, 256  ;;  %p493_p4 = scmp.lt.s32.totalorder %s30_s16, %s30_s16 }
   0xb   :  { %p489_p3 = scmp.ne.s32.totalorder %s30_s16, %s488_s26  ;;  %p494_p5 = scmp.lt.s32.totalorder %s488_s26, %s488_s26 }
   0xd   :  { %p495_p6 = por %p494_p5, %p493_p4 }
   0xf   :  { %p496_p7 = pnand %p495_p6, %p489_p3 }
  0x11   :  { %499 = shalt.err (!%p496_p7)
}
  0x12   :  { %s574_s27 = smov 128   ;;  %s575_s28 = smov 8  }
  0x13   :  { %35 = dma.hbm_to_vmem [thread:$0]  %s696_s1, 256, %s30_s16, [#allocation6], %s574_s27, %s574_s27, %s575_s28  }
  0x14   :  { %s500_s7 = scalar_lea.hbm %s695_s0, 256 }
  0x15   :  { %p501_p8 = scmp.ne.s32.totalorder %s695_s0, %s500_s7  ;;  %p504_p9 = scmp.lt.u32.totalorder %s500_s7, %s695_s0 }
  0x17   :  { %p506_p10 = pnand %p504_p9, %p501_p8 }
  0x19   :  { %509 = shalt.err (!%p506_p10)
}
  0x1a   :  { %s510_s12 = scalar_lea.vmem %s606_s18, 256  ;;  %p515_p12 = scmp.lt.s32.totalorder %s606_s18, %s606_s18 }
  0x1b   :  { %p511_p11 = scmp.ne.s32.totalorder %s606_s18, %s510_s12  ;;  %p516_p13 = scmp.lt.s32.totalorder %s510_s12, %s510_s12 }
  0x1d   :  { %p517_p0 = por %p516_p13, %p515_p12 }
  0x1f   :  { %p518_p1 = pnand %p517_p0, %p511_p11 }
  0x21   :  { %521 = shalt.err (!%p518_p1)
}
  0x22   :  { %23 = dma.hbm_to_vmem [thread:$0]  %s695_s0, 256, %s606_s18, [#allocation3], %s574_s27, %s574_s27, %s575_s28  }
  0x23   :  { %s576_s14 = smov [#allocation7]   ;;  %s522_s19 = scalar_lea.hbm %s697_s2, 256 }
  0x24   :  { %s41_s15 = sshll.u32 %s576_s14, 4  ;;  %p523_p2 = scmp.ne.s32.totalorder %s697_s2, %s522_s19  ;;  %s42_s15 = int_to_ptr.vmem [resolvable:$true] %s41_s15 }
  0x25   :  { %p526_p3 = scmp.lt.u32.totalorder %s522_s19, %s697_s2 }
  0x27   :  { %p528_p4 = pnand %p526_p3, %p523_p2 }
  0x29   :  { %531 = shalt.err (!%p528_p4)
}
  0x2a   :  { %s532_s24 = scalar_lea.vmem %s42_s15, 256  ;;  %p537_p6 = scmp.lt.s32.totalorder %s42_s15, %s42_s15 }
  0x2b   :  { %p533_p5 = scmp.ne.s32.totalorder %s42_s15, %s532_s24  ;;  %p538_p7 = scmp.lt.s32.totalorder %s532_s24, %s532_s24 }
  0x2d   :  { %p539_p8 = por %p538_p7, %p537_p6 }
  0x2f   :  { %p540_p9 = pnand %p539_p8, %p533_p5 }
  0x31   :  { %543 = shalt.err (!%p540_p9)
}
  0x32   :  { %47 = dma.hbm_to_vmem [thread:$0]  %s697_s2, 256, %s42_s15, [#allocation6], %s574_s27, %s574_s27, %s575_s28  }
  0x33   :  { %566 = dma.done.wait [#allocation3], 256  }
  0x34   :  { %567 = vsyncadd [#allocation3], 4294967040 }
  0x35   :  { %568 = dma.done.wait [#allocation6], 512  }
  0x36   :  { %569 = vsyncadd [#allocation6], 4294966784  ;;  %v577_v0 = vmov 0.0   ;;  %vm578_vm0 = vmmov 0   ;;  %vm67_vm1 = vcmask 130048   ;;  %v61_v1 = vld [vmem:[#allocation5] sm:$0xff]  ;;  %v226_v7 = vlaneseq }
  0x37   :  { %441 = vmatprep.subr.mxu0 %v577_v0  ;;  %443 = vmatprep.mubr.msk.f32.mxu0 %vm578_vm0, %v577_v0  ;;  %v59_v2 = vld [vmem:[#allocation2] sm:$0xff]  ;;  %v62_v3 = vld [vmem:[#allocation5 + $0x8] sm:$0xff]  ;;  %v60_v5 = vld [vmem:[#allocation2 + $0x8] sm:$0xff]  ;;  %v579_v12 = vmov 0   ;;  %vm238_vm6 = vcmask 64512  }
  0x38   :  { %446 = vmatprep.subr.mxu1 %v577_v0  ;;  %448 = vmatprep.mubr.msk.f32.mxu1 %vm578_vm0, %v577_v0  ;;  %v65_v4 = vmul.f32 0.25, %v59_v2  ;;  %v66_v6 = vmul.f32 0.25, %v60_v5  ;;  %v220_v8 = vld [vmem:[%s698_s3] sm:$0x1]  ;;  %v221_v9 = vld [vmem:[%s698_s3 + $0x1] sm:$0x1] }
  0x39   :  { %442 = vmatpush3.xpose.msk.msra.mxu0 %vm67_vm1, %v61_v1  ;;  %447 = vmatpush3.xpose.msk.msra.mxu1 %vm67_vm1, %v62_v3  ;;  %v227_v10 = vshrl.u32 %v226_v7, 7  ;;  %vm222_vm2 = vcmp.gt.f32.partialorder %v220_v8, 0.5  ;;  %vm223_vm3 = vcmp.gt.f32.partialorder %v221_v9, 0.5  ;;  %v63_v35 = vld [vmem:[#allocation7] sm:$0xff]  ;;  %v64_v36 = vld [vmem:[#allocation7 + $0x8] sm:$0xff]  ;;  %s580_s3 = smov [#allocation8]  }
  0x3a   :  { %451 = vmatprep.subr.mxu0 %v577_v0  ;;  %456 = vmatprep.subr.mxu1 %v577_v0  ;;  %v224_v13 = vsel %vm222_vm2, 1, %v579_v12  ;;  %v225_v14 = vsel %vm223_vm3, 1, %v579_v12  ;;  %s414_s30 = sshll.u32 %s580_s3, 4  ;;  %s415_s30 = int_to_ptr.vmem [resolvable:$true] %s414_s30 }
  0x3b   :  { %v228_v11 = vsub.s32 0, %v227_v10  ;;  %s544_s5 = scalar_lea.vmem %s415_s30, 256  ;;  %p549_p11 = scmp.lt.s32.totalorder %s415_s30, %s415_s30 }
  0x3c   :  { %444 = vmatmul.mubr.msk.f32.vlgmr.msra.gmra.mrb[0].mxu0 %vm67_vm1, %v65_v4  ;;  %449 = vmatmul.mubr.msk.f32.vlgmr.msra.gmra.mrb[0].mxu1 %vm67_vm1, %v66_v6  ;;  %p545_p10 = scmp.ne.s32.totalorder %s415_s30, %s544_s5  ;;  %p550_p12 = scmp.lt.s32.totalorder %s544_s5, %s544_s5 }
  0x3d   :  { %453 = vmatprep.mubr.msk.f32.mxu0 %vm578_vm0, %v577_v0  ;;  %458 = vmatprep.mubr.msk.f32.mxu1 %vm578_vm0, %v577_v0  ;;  %v229_v15 = vrot.slane %v224_v13, %v228_v11  ;;  %v233_v16 = vrot.slane %v225_v14, %v228_v11 }
  0x3e   :  { %452 = vmatpush3.msra.mxu0 %v63_v35  ;;  %457 = vmatpush3.msra.mxu1 %v64_v36  ;;  %p551_p13 = por %p550_p12, %p549_p11 }
  0x3f   :  { %vm234_vm4 = vcmp.eq.s32.totalorder %v229_v15, 1  ;;  %vm235_vm5 = vcmp.eq.s32.totalorder %v233_v16, 1 }
  0x40   :  { %p552_p0 = pnand %p551_p13, %p545_p10 }
 0x10f   :  { %v140_v17 = vpop.f32.mrb[0].mxu0  ;;  %v216_v18 = vpop.f32.mrb[0].mxu1 }
 0x110   :  { %v236_v19 = vsel %vm234_vm4, %v140_v17, -1000000.0  ;;  %v445_v20 = vpop.f32.mrb[1].mxu0  ;;  %v237_v21 = vsel %vm235_vm5, %v216_v18, -1000000.0  ;;  %v450_v22 = vpop.f32.mrb[1].mxu1 }
 0x111   :  { %v239_v23 = vsel %vm238_vm6, %v236_v19, -inf  ;;  %v242_v24 = vsel %vm238_vm6, %v237_v21, -inf }
 0x112   :  { %240 = vmax.xlane.f32.xlu0 %v239_v23 }
 0x116   :  { %243 = vmax.xlane.f32.xlu0 %v242_v24 }
 0x19f   :  { %v241_v25 = vpop.xlane.xlu0 %240 }
 0x1a0   :  { %v245_v26 = vsub.f32 %v236_v19, %v241_v25 }
 0x1a2   :  { %v247_v27 = vmul.f32 1.442695, %v245_v26 }
 0x1a3   :  { %v244_v28 = vpop.xlane.xlu0 %243 }
 0x1a4   :  { %470 = vpow2.f32 %v247_v27  ;;  %v246_v29 = vsub.f32 %v237_v21, %v244_v28 }
 0x1a6   :  { %v249_v30 = vmul.f32 1.442695, %v246_v29 }
 0x1a8   :  { %472 = vpow2.f32 %v249_v30 }
 0x1ae   :  { %v471_v31 = vpop.eup %470 }
 0x1af   :  { %v251_v32 = vsel %vm238_vm6, %v471_v31, 0.0 }
 0x1b0   :  { %252 = vadd.xlane.f32.xlu1 %v251_v32 }
 0x1b2   :  { %v473_v33 = vpop.eup %472 }
 0x1b3   :  { %v254_v34 = vsel %vm238_vm6, %v473_v33, 0.0 }
 0x1b4   :  { %255 = vadd.xlane.f32.xlu1 %v254_v34 }
 0x23d   :  { %v253_v37 = vpop.xlane.xlu1 %252 }
 0x23e   :  { %474 = vrcp.f32 %v253_v37 }
 0x241   :  { %v256_v38 = vpop.xlane.xlu1 %255 }
 0x242   :  { %476 = vrcp.f32 %v256_v38 }
 0x248   :  { %v475_v39 = vpop.eup %474 }
 0x249   :  { %v259_v40 = vmul.f32 %v475_v39, %v471_v31 }
 0x24b   :  { %454 = vmatmul.mubr.msk.f32.vlgmr.msra.gmra.mrb[2].mxu0 %vm238_vm6, %v259_v40 }
 0x24c   :  { %v477_v41 = vpop.eup %476 }
 0x24d   :  { %v260_v42 = vmul.f32 %v477_v41, %v473_v33 }
 0x24f   :  { %459 = vmatmul.mubr.msk.f32.vlgmr.msra.gmra.mrb[2].mxu1 %vm238_vm6, %v260_v42 }
 0x31e   :  { %v330_v43 = vpop.f32.mrb[2].mxu0 }
 0x31f   :  { %407 = vst.msk [vmem:[#allocation8] sm:$0xff] %vm67_vm1, %v330_v43  ;;  %v455_v44 = vpop.f32.mrb[3].mxu0 }
 0x322   :  { %v403_v45 = vpop.f32.mrb[2].mxu1 }
 0x323   :  { %408 = vst.msk [vmem:[#allocation8 + $0x8] sm:$0xff] %vm67_vm1, %v403_v45  ;;  %v460_v46 = vpop.f32.mrb[3].mxu1 }
 0x324   :  { %555 = shalt.err (!%p552_p0)
}
 0x325   :  { %s556_s8 = scalar_lea.hbm %s699_s4, 256 }
 0x326   :  { %p557_p1 = scmp.ne.s32.totalorder %s699_s4, %s556_s8  ;;  %p560_p2 = scmp.lt.u32.totalorder %s556_s8, %s699_s4 }
 0x328   :  { %p562_p3 = pnand %p560_p2, %p557_p1 }
 0x32a   :  { %565 = shalt.err (!%p562_p3)
}
 0x32b   :  { %420 = dma.vmem_to_hbm [thread:$0]  %s415_s30, 256, %s699_s4, [#allocation4], %s574_s27, %s574_s27, %s575_s28  }
 0x32c   :  { %570 = dma.done.wait [#allocation4], 256  }
 0x32d   :  { %571 = vsyncadd [#allocation4], 4294967040 }
 0x32e   :  { %424 = vsyncpa [#allocation3], 1 }
 0x32f   :  { %425 = vsyncpa [#allocation6], 1 }
 0x330   :  { %426 = vsyncpa [#allocation4], 1 }

</bundles_post_ra>
